<compile_context>
chip_gen: v6e
topology: v6e:2x2x1
jax: 0.10.0
libtpu: 0.0.40
codegen_flags: <defaults>
</compile_context>

<pallas_src>
import functools

import numpy as np
import jax
import jax.numpy as jnp
from jax.experimental import pallas as pl
from jax.experimental.pallas import tpu as pltpu


# ----------------------------- Pass 1: conv + residual -----------------------------
def _conv_res_kernel(xlo_ref, xhi_ref, wconv_ref, wres_ref, conv_ref, res_ref,
                     *, K, dilation):
    """Causal dilated conv as one stacked-contraction MXU matmul + 1x1 residual conv."""
    lo = xlo_ref[...]                                   # (Cin, Lt) bf16, time block t
    hi = xhi_ref[...]                                   # (Cin, Lt) bf16, time block t+1 (halo)
    taps = []
    for k in range(K):                                  # static unroll, K is small
        s = k * dilation
        if s == 0:
            taps.append(lo)
        else:
            # tap k = x_pad[:, t*Lt + s : t*Lt + s + Lt]  (lane shift via XLU, cheap)
            taps.append(jnp.concatenate([lo[:, s:], hi[:, :s]], axis=1))
    slab = jnp.concatenate(taps, axis=0)                # (K*Cin, Lt) in-kernel im2col slab
    conv_ref[...] = jnp.dot(wconv_ref[...], slab,
                            preferred_element_type=jnp.float32)        # (2*oc, Lt) f32
    # Tap K-1 is the unshifted input tile -> reuse for the 1x1 residual conv.
    res_ref[...] = jnp.dot(wres_ref[...], taps[K - 1],
                           preferred_element_type=jnp.float32)         # (oc, Lt) f32


# --------------------- Pass 2: fused BN+FiLM FMA -> GatedAF -> +res ----------------
def _film_gate_kernel(conv_ref, res_ref, scale_ref, shift_ref, o_ref):
    # BN + FiLM folded into one per-channel scale/shift -> single FMA sweep.
    xf = conv_ref[...] * scale_ref[...] + shift_ref[...]    # (2, oc, Lt) f32 (lane broadcast)
    # GatedAF: chunk(dim=channel) -> tanh(first half) * sigmoid(second half).
    gated = jnp.tanh(xf[0]) * jax.nn.sigmoid(xf[1])         # halves are leading-index views
    o_ref[...] = (gated + res_ref[...]).astype(o_ref.dtype)


# ----------------------------------- Wrapper ----------------------------------------
def gcn1d_block(x, cond, w_conv, w_adapt, b_adapt, w_res, *, kernel_size, dilation,
                lane_tile=128, matmul_dtype=jnp.bfloat16):
    """x: (B, in_ch, L) [PyTorch NCL], cond: (B, cond_dim). Returns (B, out_ch, L).

    For realistic L use lane_tile=512..1024 (must be a multiple of 128) so MXU/DMA
    overheads amortize; 128 keeps the toy test lane-dense with no wasted tiles.
    """
    B, Cin, L = x.shape
    two_oc = w_conv.shape[0]
    assert two_oc % 2 == 0
    oc = two_oc // 2
    K = kernel_size
    pad = (K - 1) * dilation
    Lt = lane_tile
    assert Lt % 128 == 0, "lane tile must be a multiple of 128"
    assert pad < Lt, "halo must fit in one neighboring tile"  # TODO(synk): multi-block halo
    nLt = -(-L // Lt)                # ceil(L / Lt)
    Lpad = nLt * Lt

    # ---- one-time wrapper layout plumbing (cheap) ----
    # Causal left pad + right pad so time block (t+1) always exists for the halo read.
    x_pad = jnp.pad(x, ((0, 0), (0, 0), (pad, (nLt + 1) * Lt - pad - L)))
    x_pad = x_pad.astype(matmul_dtype)                                  # (B, Cin, (nLt+1)*Lt)
    # Conv weight flattened to match the (k, c) row ordering of the in-kernel slab.
    w_conv2d = jnp.transpose(w_conv, (0, 2, 1)).reshape(two_oc, K * Cin).astype(matmul_dtype)
    w_res2d = w_res.astype(matmul_dtype)

    ib = np.dtype(matmul_dtype).itemsize

    def vmem_limit(per_tile_bytes):
        # 4x: double-buffered inputs/outputs + in-kernel temps; clamp for v5e/v6e/v7x.
        return int(min(max(4 * per_tile_bytes, 16 * 2**20), 48 * 2**20))

    # -------------------- pass 1: per-tile conv + residual matmuls --------------------
    p1_bytes = (2 * Cin * Lt * ib                 # lo/hi input tiles
                + K * Cin * Lt * ib               # in-kernel tap slab
                + two_oc * Lt * 4 + oc * Lt * 4   # conv/res output tiles (f32)
                + (two_oc * K * Cin + oc * Cin) * ib)
    conv, res = pl.pallas_call(
        functools.partial(_conv_res_kernel, K=K, dilation=dilation),
        out_shape=(jax.ShapeDtypeStruct((B, two_oc, Lpad), jnp.float32),
                   jax.ShapeDtypeStruct((B, oc, Lpad), jnp.float32)),
        grid_spec=pltpu.PrefetchScalarGridSpec(
            num_scalar_prefetch=0,
            grid=(B, nLt),
            in_specs=[
                pl.BlockSpec((None, Cin, Lt), lambda b, t: (b, 0, t)),      # current tile
                pl.BlockSpec((None, Cin, Lt), lambda b, t: (b, 0, t + 1)),  # right-halo tile
                pl.BlockSpec((two_oc, K * Cin), lambda b, t: (0, 0)),       # conv weight (full)
                pl.BlockSpec((oc, Cin), lambda b, t: (0, 0)),               # res weight (full)
            ],
            out_specs=(
                pl.BlockSpec((None, two_oc, Lt), lambda b, t: (b, 0, t)),
                pl.BlockSpec((None, oc, Lt), lambda b, t: (b, 0, t)),
            )),
        compiler_params=pltpu.CompilerParams(
            dimension_semantics=("parallel", "parallel"),
            vmem_limit_bytes=vmem_limit(p1_bytes)),
    )(x_pad, x_pad, w_conv2d, w_res2d)

    # ---- tiny wrapper-side reductions (sanctioned): training-mode BN stats + FiLM fold ----
    conv_valid = conv[:, :, :L]                                     # exclude padded lanes
    mean = jnp.mean(conv_valid, axis=(0, 2))                        # (2*oc,)
    var = jnp.mean(jnp.square(conv_valid - mean[None, :, None]), axis=(0, 2))
    inv = jax.lax.rsqrt(var + 1e-5)                                 # (2*oc,) f32

    gb = cond.astype(jnp.float32) @ w_adapt.T.astype(jnp.float32) + b_adapt   # (B, 4*oc)
    g, beta = gb[:, :two_oc], gb[:, two_oc:]
    scale = g * inv[None, :]                                        # (B, 2*oc)
    shift = beta - mean[None, :] * scale                            # (B, 2*oc)

    # Free (view) reshapes: gate halves become sublane-aligned leading-index views.
    conv2 = conv.reshape(B, 2, oc, Lpad)
    scale2 = scale.reshape(B, 2, oc, 1)
    shift2 = shift.reshape(B, 2, oc, 1)

    # ------------- pass 2: normalize+FiLM (one FMA) -> GatedAF -> + residual -------------
    p2_bytes = (two_oc * Lt * 4 + oc * Lt * 4       # conv/res input tiles
                + 2 * two_oc * 4                    # scale/shift columns
                + oc * Lt * 4)                      # output tile
    out = pl.pallas_call(
        _film_gate_kernel,
        out_shape=jax.ShapeDtypeStruct((B, oc, Lpad), jnp.float32),
        grid_spec=pltpu.PrefetchScalarGridSpec(
            num_scalar_prefetch=0,
            grid=(B, nLt),
            in_specs=[
                pl.BlockSpec((None, 2, oc, Lt), lambda b, t: (b, 0, 0, t)),
                pl.BlockSpec((None, oc, Lt), lambda b, t: (b, 0, t)),
                pl.BlockSpec((None, 2, oc, 1), lambda b, t: (b, 0, 0, 0)),
                pl.BlockSpec((None, 2, oc, 1), lambda b, t: (b, 0, 0, 0)),
            ],
            out_specs=pl.BlockSpec((None, oc, Lt), lambda b, t: (b, 0, t))),
        compiler_params=pltpu.CompilerParams(
            dimension_semantics=("parallel", "parallel"),
            vmem_limit_bytes=vmem_limit(p2_bytes)),
    )(conv2, res, scale2, shift2)

    return out[:, :, :L]                                            # (B, oc, L) NCL


# ------------------------------ Pure-JAX reference ------------------------------------
def gcn1d_block_ref(x, cond, w_conv, w_adapt, b_adapt, w_res, kernel_size, dilation):
    """Matches the PyTorch forward (training-mode BN, affine=False, eps=1e-5)."""
    B, Cin, L = x.shape
    two_oc = w_conv.shape[0]
    oc = two_oc // 2
    pad = (kernel_size - 1) * dilation
    x_pad = jnp.pad(x, ((0, 0), (0, 0), (pad, 0)))

    conv = jnp.zeros((B, two_oc, L), jnp.float32)
    for k in range(kernel_size):
        conv = conv + jnp.einsum('oc,bcl->bol', w_conv[:, :, k],
                                 x_pad[:, :, k * dilation:k * dilation + L])

    gb = cond @ w_adapt.T + b_adapt
    g = gb[:, :two_oc][:, :, None]
    bb = gb[:, two_oc:][:, :, None]

    mean = jnp.mean(conv, axis=(0, 2), keepdims=True)
    var = jnp.mean((conv - mean) ** 2, axis=(0, 2), keepdims=True)
    xn = (conv - mean) * jax.lax.rsqrt(var + 1e-5)
    xf = xn * g + bb

    gated = jnp.tanh(xf[:, :oc]) * jax.nn.sigmoid(xf[:, oc:])       # GatedAF
    res = jnp.einsum('oc,bcl->bol', w_res, x)
    return gated + res


if __name__ == "__main__":
    # Small shapes consistent with the module: in_ch=4, out_ch=4, K=3, dilation=1,
    # cond_dim=3 (len(IR_FAMILIES)), batch=2, sequence length=16.
    B, Cin, OC, K, DIL, L, CD = 2, 4, 4, 3, 1, 16, 3

    key = jax.random.PRNGKey(0)
    ks = jax.random.split(key, 6)
    x = jax.random.normal(ks[0], (B, Cin, L), jnp.float32)
    cond = jax.random.normal(ks[1], (B, CD), jnp.float32)
    w_conv = 0.3 * jax.random.normal(ks[2], (2 * OC, Cin, K), jnp.float32)   # Conv1dCausal weight
    w_adapt = 0.3 * jax.random.normal(ks[3], (4 * OC, CD), jnp.float32)      # FiLM adaptor weight
    b_adapt = 0.1 * jax.random.normal(ks[4], (4 * OC,), jnp.float32)         # FiLM adaptor bias
    w_res = 0.3 * jax.random.normal(ks[5], (OC, Cin), jnp.float32)           # 1x1 residual weight

    out = gcn1d_block(x, cond, w_conv, w_adapt, b_adapt, w_res,
                      kernel_size=K, dilation=DIL)
    out = jax.block_until_ready(out)

    # (1) Tight check vs a reference whose matmul operands are bf16-rounded
    #     (bf16 x bf16 products are exact in the f32 MXU accumulation).
    q = lambda a: a.astype(jnp.bfloat16).astype(jnp.float32)
    ref_q = gcn1d_block_ref(q(x), cond, q(w_conv), w_adapt, b_adapt, q(w_res), K, DIL)
    np.testing.assert_allclose(np.asarray(out), np.asarray(ref_q), rtol=1e-3, atol=1e-3)

    # (2) Loose check vs the pure-f32 PyTorch-equivalent reference
    #     (difference == bf16 quantization of the conv/residual operands).
    ref = gcn1d_block_ref(x, cond, w_conv, w_adapt, b_adapt, w_res, K, DIL)
    np.testing.assert_allclose(np.asarray(out), np.asarray(ref), rtol=5e-2, atol=5e-2)

    print("KERNEL_OK")
</pallas_src>

<mosaic_0001>
module attributes {stable_mosaic.version = 11 : i64} {
  func.func @_conv_res_kernel(%arg0: i32, %arg1: i32, %arg2: memref<1x4x128xbf16, #tpu.memory_space<vmem>>, %arg3: memref<1x4x128xbf16, #tpu.memory_space<vmem>>, %arg4: memref<8x12xbf16, #tpu.memory_space<vmem>>, %arg5: memref<4x4xbf16, #tpu.memory_space<vmem>>, %arg6: memref<1x8x128xf32, #tpu.memory_space<vmem>>, %arg7: memref<1x4x128xf32, #tpu.memory_space<vmem>>) attributes {dimension_semantics = [#tpu.dimension_semantics<parallel>, #tpu.dimension_semantics<parallel>], iteration_bounds = array<i64: 2, 1>, scalar_prefetch = 0 : i64, scratch_operands = 0 : i64, tpu.core_type = #tpu.core_type<tc>, window_params = [{transform_indices = @transform_0, window_bounds = array<i64: 1, 4, 128>}, {transform_indices = @transform_1, window_bounds = array<i64: 1, 4, 128>}, {pipeline_mode = #tpu.pipeline_mode<synchronous>, transform_indices = @transform_2, window_bounds = array<i64: 8, 12>}, {pipeline_mode = #tpu.pipeline_mode<synchronous>, transform_indices = @transform_3, window_bounds = array<i64: 4, 4>}, {transform_indices = @transform_4, window_bounds = array<i64: 1, 8, 128>}, {transform_indices = @transform_5, window_bounds = array<i64: 1, 4, 128>}]} {
    %c0 = arith.constant 0 : index
    %c0_0 = arith.constant 0 : index
    %c0_1 = arith.constant 0 : index
    %0 = vector.load %arg2[%c0, %c0_0, %c0_1] : memref<1x4x128xbf16, #tpu.memory_space<vmem>>, vector<1x4x128xbf16>
    %1 = vector.shape_cast %0 : vector<1x4x128xbf16> to vector<4x128xbf16>
    %c0_2 = arith.constant 0 : index
    %c0_3 = arith.constant 0 : index
    %c0_4 = arith.constant 0 : index
    %2 = vector.load %arg3[%c0_2, %c0_3, %c0_4] : memref<1x4x128xbf16, #tpu.memory_space<vmem>>, vector<1x4x128xbf16>
    %3 = vector.shape_cast %2 : vector<1x4x128xbf16> to vector<4x128xbf16>
    %4 = vector.extract_strided_slice %1 {offsets = [0, 1], sizes = [4, 127], strides = [1, 1]} : vector<4x128xbf16> to vector<4x127xbf16>
    %5 = vector.extract_strided_slice %3 {offsets = [0, 0], sizes = [4, 1], strides = [1, 1]} : vector<4x128xbf16> to vector<4x1xbf16>
    %6 = tpu.concatenate %4, %5 in 1 : vector<4x127xbf16>, vector<4x1xbf16> -> vector<4x128xbf16>
    %7 = vector.extract_strided_slice %1 {offsets = [0, 2], sizes = [4, 126], strides = [1, 1]} : vector<4x128xbf16> to vector<4x126xbf16>
    %8 = vector.extract_strided_slice %3 {offsets = [0, 0], sizes = [4, 2], strides = [1, 1]} : vector<4x128xbf16> to vector<4x2xbf16>
    %9 = tpu.concatenate %7, %8 in 1 : vector<4x126xbf16>, vector<4x2xbf16> -> vector<4x128xbf16>
    %10 = tpu.concatenate %1, %6, %9 in 0 : vector<4x128xbf16>, vector<4x128xbf16>, vector<4x128xbf16> -> vector<12x128xbf16>
    %c0_5 = arith.constant 0 : index
    %c0_6 = arith.constant 0 : index
    %11 = vector.load %arg4[%c0_5, %c0_6] : memref<8x12xbf16, #tpu.memory_space<vmem>>, vector<8x12xbf16>
    %cst = arith.constant dense<0.000000e+00> : vector<8x128xf32>
    %12 = tpu.matmul %11, %10, %cst {dimension_numbers = #tpu.dot_dimension_numbers<[1], [0], [0], [1], [0, 0, 1, 1], [], []>} : vector<8x12xbf16>, vector<12x128xbf16>, vector<8x128xf32> -> vector<8x128xf32>
    %c0_7 = arith.constant 0 : index
    %c0_8 = arith.constant 0 : index
    %c0_9 = arith.constant 0 : index
    %13 = vector.load %arg6[%c0_7, %c0_8, %c0_9] : memref<1x8x128xf32, #tpu.memory_space<vmem>>, vector<1x8x128xf32>
    %14 = vector.shape_cast %13 : vector<1x8x128xf32> to vector<8x128xf32>
    %15 = vector.shape_cast %12 : vector<8x128xf32> to vector<1x8x128xf32>
    tpu.vector_store %arg6[%c0_7, %c0_8, %c0_9], %15 {strides = array<i32>} : memref<1x8x128xf32, #tpu.memory_space<vmem>>, vector<1x8x128xf32>,
    %c0_10 = arith.constant 0 : index
    %c0_11 = arith.constant 0 : index
    %16 = vector.load %arg5[%c0_10, %c0_11] : memref<4x4xbf16, #tpu.memory_space<vmem>>, vector<4x4xbf16>
    %cst_12 = arith.constant dense<0.000000e+00> : vector<4x128xf32>
    %17 = tpu.matmul %16, %9, %cst_12 {dimension_numbers = #tpu.dot_dimension_numbers<[1], [0], [0], [1], [0, 0, 1, 1], [], []>} : vector<4x4xbf16>, vector<4x128xbf16>, vector<4x128xf32> -> vector<4x128xf32>
    %c0_13 = arith.constant 0 : index
    %c0_14 = arith.constant 0 : index
    %c0_15 = arith.constant 0 : index
    %18 = vector.load %arg7[%c0_13, %c0_14, %c0_15] : memref<1x4x128xf32, #tpu.memory_space<vmem>>, vector<1x4x128xf32>
    %19 = vector.shape_cast %18 : vector<1x4x128xf32> to vector<4x128xf32>
    %20 = vector.shape_cast %17 : vector<4x128xf32> to vector<1x4x128xf32>
    tpu.vector_store %arg7[%c0_13, %c0_14, %c0_15], %20 {strides = array<i32>} : memref<1x4x128xf32, #tpu.memory_space<vmem>>, vector<1x4x128xf32>,
    return
  }
  func.func @transform_0(%arg0: i32, %arg1: i32) -> (i32, i32, i32) {
    %c0_i32 = arith.constant 0 : i32
    %c0_i32_0 = arith.constant 0 : i32
    return %arg0, %c0_i32, %arg1 : i32, i32, i32
  }
  func.func @transform_1(%arg0: i32, %arg1: i32) -> (i32, i32, i32) {
    %c1_i32 = arith.constant 1 : i32
    %0 = arith.addi %arg1, %c1_i32 : i32
    %c0_i32 = arith.constant 0 : i32
    %c0_i32_0 = arith.constant 0 : i32
    return %arg0, %c0_i32, %0 : i32, i32, i32
  }
  func.func @transform_2(%arg0: i32, %arg1: i32) -> (i32, i32) {
    %c0_i32 = arith.constant 0 : i32
    %c0_i32_0 = arith.constant 0 : i32
    %c0_i32_1 = arith.constant 0 : i32
    return %c0_i32, %c0_i32_0 : i32, i32
  }
  func.func @transform_3(%arg0: i32, %arg1: i32) -> (i32, i32) {
    %c0_i32 = arith.constant 0 : i32
    %c0_i32_0 = arith.constant 0 : i32
    %c0_i32_1 = arith.constant 0 : i32
    return %c0_i32, %c0_i32_0 : i32, i32
  }
  func.func @transform_4(%arg0: i32, %arg1: i32) -> (i32, i32, i32) {
    %c0_i32 = arith.constant 0 : i32
    %c0_i32_0 = arith.constant 0 : i32
    return %arg0, %c0_i32, %arg1 : i32, i32, i32
  }
  func.func @transform_5(%arg0: i32, %arg1: i32) -> (i32, i32, i32) {
    %c0_i32 = arith.constant 0 : i32
    %c0_i32_0 = arith.constant 0 : i32
    return %arg0, %c0_i32, %arg1 : i32, i32, i32
  }
}

</mosaic_0001>

<bundles_post_ra>
// kernel: tpu_custom_call.1
= control target key start
LH: loop header
LB: loop body
LE: loop exit
PB: predicated region body
PF: predicated region fallthrough
CT: control target
= control target key end

     0   :  { %s1258_s0 = inlined_call_operand.hbm [shape: bf16[2,4,256], index: 0, kind: input, shape index: {}]   ;;  %s1259_s1 = inlined_call_operand.hbm [shape: bf16[2,4,256], index: 1, kind: input, shape index: {}]   ;;  %s1260_s2 = inlined_call_operand.hbm [shape: bf16[8,12], index: 2, kind: input, shape index: {}]   ;;  %s1261_s3 = inlined_call_operand.vmem [shape: bf16[4,4], index: 3, kind: input, shape index: {}]   ;;  %s1262_s4 = inlined_call_operand.hbm [shape: f32[2,8,128], index: 4, kind: output, shape index: {0}]   ;;  %s1263_s5 = inlined_call_operand.hbm [shape: f32[2,4,128], index: 5, kind: output, shape index: {1}]  }
   0x1   :  { %1265 = sst [smem:[#allocation17_spill]] %s1258_s0 }
   0x2   :  { %1266 = sst [smem:[#allocation18_spill]] %s1259_s1 }
   0x3   :  { %1267 = sst [smem:[#allocation19_spill]] %s1260_s2 }
   0x4   :  { %11 = vsyncpa [#allocation3], 0 }
   0x5   :  { %13 = vsyncpa [#allocation3 + $0x1], 0 }
   0x6   :  { %14 = vsyncpa [#allocation6], 0 }
   0x7   :  { %16 = vsyncpa [#allocation6 + $0x1], 0 }
   0x8   :  { %17 = vsyncpa [#allocation4], 0 }
   0x9   :  { %19 = vsyncpa [#allocation4 + $0x1], 0 }
   0xa   :  { %20 = vsyncpa [#allocation10], 0 }
   0xb   :  { %22 = vsyncpa [#allocation10 + $0x1], 0  ;;  %s1029_s18 = smov 0   ;;  %s1031_s19 = smov 0  }
   0xc   :  { %s1033_s20 = smov 0   ;;  %s1035_s21 = smov 0  }
   0xd   :  { %s1037_s22 = smov 0   ;;  %s1039_s23 = smov 0  }
   0xe LB: > { %s1060_s24 = sadd.s32 4294967295, %s987_s23   ;;  %s655_s25 = sadd.s32 4294967294, %s987_s23   ;;  %s987_s23 = sphi %s1039_s23, %s28_s23   ;;  %s983_s22 = sphi %s1037_s22, %s1286_s22   ;;  %s979_s21 = sphi %s1035_s21, %s1285_s21   ;;  %s975_s20 = sphi %s1033_s20, %s1284_s20   ;;  %s971_s19 = sphi %s1031_s19, %s1283_s19   ;;  %s967_s18 = sphi %s1029_s18, %s1282_s18  }
   0xf   : > { %p62_p0 = scmp.ne.s32.totalorder %s971_s19, %s967_s18  ;;  %p63_p1 = scmp.eq.s32.totalorder %s1060_s24, 0 }
  0x10   : > { %p166_p3 = scmp.eq.s32.totalorder %s655_s25, 1  ;;  %p656_p5 = scmp.ge.s32.totalorder %s987_s23, 1 }
  0x11   : > { %p1069_p4 = por %p63_p1, %p62_p0  ;;  %p201_p7 = scmp.lt.s32.totalorder %s987_s23, 3 }
  0x12   : > { %p1074_p6 = por %p166_p3, %p62_p0  ;;  %s989_s29 = smov [#allocation7]  }
  0x13   : > { %p1079_p8 = pnand %p656_p5, %p201_p7  ;;  %s214_s30 = sshll.u32 %s989_s29, 4  ;;  %s215_s30 = int_to_ptr.vmem [resolvable:$true] %s214_s30 }
  0x14   : > { %s1269_s27 = scalar_select %p1074_p6, 1, 0 }
  0x15   : > { %p710_p10 = pneg %p1079_p8  ;;  %s40_s7 = sadd.s32 1, %s983_s22 }
  0x16   : > { %s49_s8 = sadd.s32 1, %s975_s20  ;;  %p42_p12 = scmp.ge.s32.totalorder %s40_s7, 2 }
  0x17   : > { %p1088_p11 = pnand %p710_p10, %p63_p1  ;;  %s797_s9 = scalar_lea.vmem %s215_s30, 64 }
  0x18   : > { %p798_p0 = scmp.ne.s32.totalorder %s215_s30, %s797_s9  ;;  %p805_p7 = scmp.lt.s32.totalorder %s215_s30, %s215_s30 }
  0x19   : > { %p788_p13 = pneg %p1088_p11  ;;  %p806_p2 = scmp.lt.s32.totalorder %s797_s9, %s797_s9 }
  0x1b   : > { %p800_p3 = pnand %p798_p0, %p788_p13  ;;  %p807_p9 = por %p806_p2, %p805_p7 }
  0x1d   : > { %p801_p5 = pneg %p800_p3 }
  0x1f   : > { %p808_p6 = pnand %p807_p9, %p801_p5 }
  0x21   : > { %811 = shalt.err (!%p808_p6)
}
  0x22   : > { %s1272_s2 = sld [smem:[#allocation19_spill]]  ;;  %s1288_s7 = smov (%p42_p12, %s40_s7), 0 }
  0x23   : > { %1273 = sst [smem:[#allocation16_spill]] %s1288_s7  ;;  %p56_p2 = scmp.ne.s32.totalorder %s975_s20, %s971_s19 }
  0x24   : > { %p57_p6 = scmp.eq.s32.totalorder %s987_s23, 0  ;;  %s44_s12 = ssub.s32 %s983_s22, %s1288_s7 }
  0x25   : > { %p729_p9 = scmp.lt.s32.totalorder %s987_s23, 2  ;;  %p47_p10 = scmp.eq.s32.totalorder %s44_s12, 0 }
  0x26   : > { %p58_p13 = por %p57_p6, %p56_p2  ;;  %p1274_p0 = scmp.eq.s32.totalorder %s1060_s24, 1 }
  0x27   : > { %s228_s14 = sand.u32 1, %s975_s20   ;;  %s680_s17 = sshll.u32 %s983_s22, 6 }
  0x28   : > { %713 = dma.hbm_to_vmem [thread:$0]  (!%p1088_p11), %s1272_s2, 64, %s215_s30, [#allocation6]  }
  0x29   : > { %p1111_p3 = por %p1274_p0, %p56_p2  ;;  %s659_s16 = sshll.u32 %s228_s14, 1 }
  0x2a   : > { %s1117_s15 = scalar_select %p47_p10, %s975_s20, %s49_s8  }
  0x2b   : > { %s1276_s0 = sld [smem:[#allocation17_spill]]  ;;  %s232_s6 = scalar_lea.vmem [#allocation2], %s659_s16 }
  0x2c   : > { %s241_s9 = sshll.u32 %s232_s6, 4  ;;  %p1123_p11 = pnand %p729_p9, %p58_p13  ;;  %s242_s9 = int_to_ptr.vmem [resolvable:$true] %s241_s9 }
  0x2d   : > { %s1278_s1 = sld [smem:[#allocation18_spill]]  ;;  %s248_s2 = sand.u32 1, %s987_s23  }
  0x2e   : > { %s229_s7 = scalar_lea.sflag [#allocation3], %s228_s14  ;;  %p814_p12 = pneg %p1123_p11 }
  0x2f   : > { %s825_s25 = scalar_lea.vmem %s242_s9, 32  ;;  %s990_s29 = smov [#allocation2]  }
  0x30   : > { %p826_p5 = scmp.ne.s32.totalorder %s242_s9, %s825_s25  ;;  %s830_s6 = sshll.u32 %s990_s29, 4  ;;  %s831_s6 = int_to_ptr.vmem [resolvable:$false] %s830_s6 }
  0x31   : > { %s239_s30 = scalar_lea.hbm %s1276_s0, %s680_s17  ;;  %s832_s0 = scalar_lea.vmem %s831_s6, 64 }
  0x32   : > { %p828_p7 = pnand %p826_p5, %p814_p12  ;;  %p833_p6 = scmp.lt.s32.totalorder %s242_s9, %s831_s6 }
  0x33   : > { %s1130_s8 = scalar_lea.hbm %s1278_s1, %s680_s17  ;;  %p834_p9 = scmp.lt.s32.totalorder %s832_s0, %s825_s25 }
  0x34   : > { %p829_p2 = pneg %p828_p7 }
  0x35   : > { %p835_p10 = por %p834_p9, %p833_p6 }
  0x37   : > { %p836_p13 = pnand %p835_p10, %p829_p2 }
  0x39   : > { %839 = shalt.err (!%p836_p13)
}
  0x3a   : > { %717 = dma.hbm_to_vmem [thread:$0]  (!%p1123_p11), %s239_s30, 32, %s242_s9, %s229_s7  }
  0x3b   : > { %s558_s14 = scalar_lea.hbm %s1130_s8, 32  ;;  %s252_s17 = scalar_lea.vmem [#allocation5], %s659_s16 }
  0x3c   : > { %s262_s11 = sshll.u32 %s252_s17, 4  ;;  %s249_s12 = scalar_lea.sflag [#allocation6], %s248_s2  ;;  %s263_s11 = int_to_ptr.vmem [resolvable:$true] %s262_s11 }
  0x3d   : > { %s853_s1 = scalar_lea.vmem %s263_s11, 32  ;;  %s991_s0 = smov [#allocation5]  }
  0x3e   : > { %p854_p0 = scmp.ne.s32.totalorder %s263_s11, %s853_s1  ;;  %s858_s25 = sshll.u32 %s991_s0, 4  ;;  %s859_s25 = int_to_ptr.vmem [resolvable:$false] %s858_s25 }
  0x3f   : > { %s860_s29 = scalar_lea.vmem %s859_s25, 64  ;;  %p861_p2 = scmp.lt.s32.totalorder %s263_s11, %s859_s25 }
  0x40   : > { %p856_p5 = pnand %p854_p0, %p814_p12  ;;  %p862_p6 = scmp.lt.s32.totalorder %s860_s29, %s853_s1 }
  0x42   : > { %p857_p7 = pneg %p856_p5  ;;  %p863_p9 = por %p862_p6, %p861_p2 }
  0x44   : > { %p864_p10 = pnand %p863_p9, %p857_p7 }
  0x46   : > { %867 = shalt.err (!%p864_p10)
}
  0x47   : > { %720 = dma.hbm_to_vmem [thread:$0]  (!%p1123_p11), %s558_s14, 32, %s263_s11, %s249_s12  }
  0x48   : > { %271 = sbr.rel (%p1079_p8) target bundleno = 447 (0x1bf), region = 36  ;;  %s1149_s2 = sand.u32 (!%p1079_p8), 1, %s971_s19  }
  0x49   : > { %s666_s7 = sshll.u32 (!%p1079_p8), %s1149_s2, 1  ;;  %s274_s16 = scalar_lea.sflag (!%p1079_p8), [#allocation3], %s1149_s2 }
  0x4a   : > { %s277_s30 = scalar_lea.vmem (!%p1079_p8), [#allocation2], %s666_s7 }
  0x4d   : > { %946 = dma.done.wait (%p1069_p4), %s274_s16, 32  }
  0x4e   : > { %948 = vsyncadd (%p1069_p4), %s274_s16, 4294967264  ;;  %s282_s1 = sand.u32 1, %s1060_s24   ;;  %s286_s28 = scalar_lea.vmem [#allocation5], %s666_s7 }
  0x4f   : > { %s283_s9 = scalar_lea.sflag [#allocation6], %s282_s1 }
  0x50   : > { %950 = dma.done.wait (%p1069_p4), %s283_s9, 32  }
  0x51   : > { %952 = vsyncadd (%p1069_p4), %s283_s9, 4294967264 }
  0x52   : > { %954 = dma.done.wait (%p63_p1), [#allocation6], 64  }
  0x53   : > { %956 = vsyncadd (%p63_p1), [#allocation6], 4294967232  ;;  %v335_v0 = vlaneseq  ;;  %v992_v1 = vmov 1983009808   ;;  %v993_v4 = vmov 0.0   ;;  %vm994_vm0 = vmmov 0  }
  0x54   : > { %v333_v2 = vunpack.c.l.s4 %v992_v1  ;;  %692 = vmatprep.subr.bf16.mxu1 %v993_v4  ;;  %686 = vmatprep.subr.bf16.mxu0 %v993_v4  ;;  %v329_v7 = vld [vmem:[%s277_s30] sm:$0x3]  ;;  %s995_s26 = smov 126   ;;  %s996_s10 = smov 127   ;;  %vm351_vm1 = vcmask 1039360   ;;  %vm359_vm2 = vcmask 1031168  }
  0x55   : > { %v336_v3 = vshrl.u32 %v335_v0, 7  ;;  %694 = vmatprep.mubr.msk.bf16.mxu1 %vm994_vm0, %v993_v4  ;;  %688 = vmatprep.mubr.msk.bf16.mxu0 %vm994_vm0, %v993_v4  ;;  %v671_v9 = vld.sshfl [vmem:[%s286_s28] sm:$0x3 pattern:$0x76325410]  ;;  %vm367_vm3 = vcmask 1041408  }
  0x56   : > { %v334_v5 = vunpack.c.0.s8 %v333_v2  ;;  %vm371_vm4 = vcmask 1043456   ;;  %v423_v19 = vld [vmem:[%s1261_s3] sm:$0x3]  ;;  %vm424_vm5 = vcmask 31744   ;;  %vm379_vm6 = vcmask 1045504   ;;  %s670_s6 = sshll.u32 %s1149_s2, 2 }
  0x57   : > { %v374_v23 = vld [vmem:[#allocation7] sm:$0xf]  ;;  %vm375_vm7 = vcmask 97280   ;;  %s669_s14 = sshll.u32 %s1149_s2, 3  ;;  %s326_s17 = scalar_lea.vmem [#allocation9], %s670_s6 }
  0x58   : > { %v337_v6 = vsub.s32 %v334_v5, %v336_v3  ;;  %s505_s11 = sshll.u32 %s326_s17, 4  ;;  %s677_s12 = sshll.u32 %s979_s21, 6  ;;  %s1172_s11 = int_to_ptr.vmem [resolvable:$true] %s505_s11 }
  0x59   : > { %s1174_s0 = scalar_lea.vmem [#allocation8], %s669_s14  ;;  %s1180_s16 = scalar_lea.hbm %s1263_s5, %s677_s12 }
  0x5a   : > { %v338_v8 = vrot.slane %v329_v7, %v337_v6  ;;  %s491_s25 = sshll.u32 %s1174_s0, 4  ;;  %s676_s30 = sshll.u32 %s979_s21, 7  ;;  %s1183_s25 = int_to_ptr.vmem [resolvable:$true] %s491_s25 }
  0x5b   : > { %s477_s1 = scalar_lea.sflag [#allocation10], %s1149_s2  ;;  %s869_s9 = scalar_lea.vmem %s1172_s11, 64 }
  0x5c   : > { %355 = vrot.lane.b32.xlu1 %v338_v8, %s995_s26  ;;  %339 = vrot.lane.b32.xlu0 %v338_v8, %s996_s10  ;;  %p870_p1 = scmp.ne.s32.totalorder %s1172_s11, %s869_s9  ;;  %s997_s28 = smov [#allocation9]  }
  0x5e   : > { %p871_p4 = pnand %p870_p1, %p1111_p3 }
  0x60   : > { %357 = vrot.lane.b32.xlu1 %v671_v9, %s995_s26  ;;  %349 = vrot.lane.b32.xlu0 %v671_v9, %s996_s10  ;;  %p872_p8 = pneg %p871_p4  ;;  %s873_s26 = sshll.u32 %s997_s28, 4  ;;  %s874_s26 = int_to_ptr.vmem [resolvable:$false] %s873_s26 }
  0x61   : > { %s875_s10 = scalar_lea.vmem %s874_s26, 128  ;;  %p876_p11 = scmp.lt.s32.totalorder %s1172_s11, %s874_s26 }
  0x62   : > { %p877_p12 = scmp.lt.s32.totalorder %s875_s10, %s869_s9 }
  0x64   : > { %p878_p13 = por %p877_p12, %p876_p11 }
  0x66   : > { %p879_p0 = pnand %p878_p13, %p872_p8 }
  0xce   : > { %v356_v10 = vpop.permute.xlu1 %355  ;;  %v340_v11 = vpop.permute.xlu0 %339 }
  0xd2   : > { %v358_v12 = vpop.permute.xlu1 %357  ;;  %v350_v13 = vpop.permute.xlu0 %349 }
  0xd3   : > { %v354_v14 = vsel %vm351_vm1, %v340_v11, %v350_v13  ;;  %v362_v15 = vsel %vm359_vm2, %v356_v10, %v358_v12 }
  0xd4   : > { %v364_v16 = vrot.slane %v354_v14, 6  ;;  %v366_v17 = vrot.slane %v362_v15, 4  ;;  %v428_v18 = vsel %vm367_vm3, %v362_v15, 0 }
  0xd5   : > { %693 = vmatpush3.bf16.msra.mxu1 %v428_v18 }
  0xd6   : > { %v370_v20 = vsel %vm367_vm3, %v329_v7, %v364_v16 }
  0xd7   : > { %v373_v21 = vsel %vm371_vm4, %v370_v20, %v366_v17 }
  0xd8   : > { %695 = vmatmul.mubr.msk.bf16.vlgmr.msra.gmra.mxu1 %vm424_vm5, %v423_v19  ;;  %v380_v22 = vsel %vm379_vm6, %v373_v21, 0 }
  0xd9   : > { %687 = vmatpush3.bf16.msra.mxu0 %v380_v22 }
  0xdc   : > { %689 = vmatmul.mubr.msk.bf16.vlgmr.msra.gmra.mxu0 %vm375_vm7, %v374_v23 }
 0x198   : > { %v464_v24 = vpop.f32.mrf.mxu1 }
 0x199   : > { %470 = vst [vmem:[%s326_s17] sm:$0xf] %v464_v24 }
 0x19a   : > { %v696_v25 = vpop.f32.mrf.mxu1 }
 0x19b   : > { %882 = shalt.err (!%p879_p0)
}
 0x19c   : > { %s883_s24 = scalar_lea.hbm %s1180_s16, 64  ;;  %s887_s14 = scalar_lea.hbm %s1263_s5, 128 }
 0x19d   : > { %p884_p5 = scmp.ne.s32.totalorder %s1180_s16, %s883_s24  ;;  %p888_p6 = scmp.lt.s32.totalorder %s1180_s16, %s1263_s5 }
 0x19e   : > { %p889_p9 = scmp.lt.s32.totalorder %s887_s14, %s883_s24 }
 0x19f   : > { %p885_p7 = pnand %p884_p5, %p1111_p3 }
 0x1a0   : > { %p890_p10 = por %p889_p9, %p888_p6 }
 0x1a1   : > { %p886_p2 = pneg %p885_p7 }
 0x1a3   : > { %p891_p1 = pnand %p890_p10, %p886_p2 }
 0x1a5   : > { %894 = shalt.err (!%p891_p1)
}
 0x1a6   : > { %707 = dma.vmem_to_hbm [thread:$0]  (%p1111_p3), %s1172_s11, 64, %s1180_s16, %s477_s1   ;;  %v416_v26 = vpop.f32.mrf.mxu0  ;;  %v467_v27 = vpop.f32.mrf.mxu1 }
 0x1a7   : > { %s1211_s9 = scalar_lea.hbm %s1262_s4, %s676_s30  ;;  %422 = vst [vmem:[%s1174_s0] sm:$0xff] %v416_v26  ;;  %s472_s28 = scalar_lea.sflag [#allocation4], %s1149_s2 }
 0x1a8   : > { %v690_v28 = vpop.f32.mrf.mxu0  ;;  %v697_v29 = vpop.f32.mrf.mxu1  ;;  %s895_s26 = scalar_lea.vmem %s1183_s25, 128  ;;  %s998_s10 = smov [#allocation8]  }
 0x1a9   : > { %p896_p4 = scmp.ne.s32.totalorder %s1183_s25, %s895_s26  ;;  %s899_s11 = sshll.u32 %s998_s10, 4  ;;  %s900_s11 = int_to_ptr.vmem [resolvable:$false] %s899_s11 }
 0x1aa   : > { %s901_s21 = scalar_lea.vmem %s900_s11, 256  ;;  %p902_p12 = scmp.lt.s32.totalorder %s1183_s25, %s900_s11 }
 0x1ab   : > { %p897_p8 = pnand %p896_p4, %p1111_p3  ;;  %p903_p13 = scmp.lt.s32.totalorder %s901_s21, %s895_s26 }
 0x1ad   : > { %p898_p11 = pneg %p897_p8  ;;  %p904_p0 = por %p903_p13, %p902_p12 }
 0x1af   : > { %p905_p5 = pnand %p904_p0, %p898_p11 }
 0x1b1   : > { %908 = shalt.err (!%p905_p5)
}
 0x1b2   : > { %s909_s0 = scalar_lea.hbm %s1211_s9, 128  ;;  %s913_s30 = scalar_lea.hbm %s1262_s4, 256 }
 0x1b3   : > { %p910_p7 = scmp.ne.s32.totalorder %s1211_s9, %s909_s0  ;;  %p914_p9 = scmp.lt.s32.totalorder %s1211_s9, %s1262_s4 }
 0x1b4   : > { %p915_p10 = scmp.lt.s32.totalorder %s913_s30, %s909_s0 }
 0x1b5   : > { %p911_p2 = pnand %p910_p7, %p1111_p3 }
 0x1b6   : > { %p916_p1 = por %p915_p10, %p914_p9 }
 0x1b7   : > { %p912_p6 = pneg %p911_p2 }
 0x1b9   : > { %p917_p4 = pnand %p916_p1, %p912_p6 }
 0x1bb   : > { %920 = shalt.err (!%p917_p4)
}
 0x1bc   : > { %706 = dma.vmem_to_hbm [thread:$0]  (%p1111_p3), %s1183_s25, 128, %s1211_s9, %s472_s28   ;;  %v419_v30 = vpop.f32.mrf.mxu0 }
 0x1be   : > { %v691_v31 = vpop.f32.mrf.mxu0 }
 0x1bf PF: > { %s517_s8 = sand.u32 1, %s967_s18   ;;  %p1279_p8 = scmp.ne.s32.totalorder %s1269_s27, 0 }
 0x1c0   : > { %p1280_p11 = scmp.ge.s32.totalorder %s987_s23, 2  ;;  %s518_s6 = scalar_lea.sflag [#allocation4], %s517_s8 }
 0x1c2   : > { %p722_p12 = pnand %p1280_p11, %p1279_p8 }
 0x1c4   : > { %p723_p13 = pneg %p722_p12 }
 0x1c6   : > { %958 = dma.done.wait (%p723_p13), %s518_s6, 128  }
 0x1c7   : > { %960 = vsyncadd (%p723_p13), %s518_s6, 4294967168  ;;  %s527_s14 = scalar_lea.sflag [#allocation10], %s517_s8 }
 0x1c8   : > { %962 = dma.done.wait (%p723_p13), %s527_s14, 64  }
 0x1c9   : > { %964 = vsyncadd (%p723_p13), %s527_s14, 4294967232  ;;  %s28_s23 = sadd.s32 1, %s987_s23   ;;  %s1281_s13 = sld [smem:[#allocation16_spill]] }
 0x1ca   : > { %p25_p3 = scmp.ge.s32.totalorder %s28_s23, 4   ;;  %s1282_s18 = smov %s971_s19 }
 0x1cb   : > { %s1283_s19 = smov %s975_s20  ;;  %s1284_s20 = smov %s1117_s15 }
 0x1cc   : > { %s1285_s21 = smov %s983_s22  ;;  %27 = sbr.rel (!%p25_p3) target bundleno = 14 (0xe), region = 115 }
 0x1cf   : > { %s1286_s22 = smov %s1281_s13 }
 0x1d1   :  { %532 = vsyncpa [#allocation3], 1 }
 0x1d2   :  { %534 = vsyncpa [#allocation3 + $0x1], 1 }
 0x1d3   :  { %535 = vsyncpa [#allocation6], 1 }
 0x1d4   :  { %537 = vsyncpa [#allocation6 + $0x1], 1 }
 0x1d5   :  { %538 = vsyncpa [#allocation4], 1 }
 0x1d6   :  { %540 = vsyncpa [#allocation4 + $0x1], 1 }
 0x1d7   :  { %541 = vsyncpa [#allocation10], 1 }
 0x1d8   :  { %543 = vsyncpa [#allocation10 + $0x1], 1 }

</bundles_post_ra>
